<compile_context>
chip_gen: v6e
topology: v6e:2x2x1
jax: 0.10.0
libtpu: 0.0.40
codegen_flags: <defaults>
</compile_context>

<pallas_src>
import functools

import jax
import jax.numpy as jnp
from jax import lax
from jax.experimental import pallas as pl
from jax.experimental.pallas import tpu as pltpu


def _residual_block_kernel(x_ref, m_ref, b_ref, o_ref, xp_ref, *, H, WC):
    # x_ref : (1, H, WC)      lane-dense activation tile for one batch image
    # m_ref : (3, WC, WC)     banded block-Toeplitz conv weights, one per kh
    # b_ref : (1, WC)         bias pre-tiled across the W dimension
    # o_ref : (1, H, WC)      lane-dense output tile
    # xp_ref: (H+16, WC)      VMEM scratch for zero ROW padding (image sits at
    #                         sublane offset 8 so the bulk store is aligned)
    PAD = 8
    x2d = x_ref[0]                                            # (H, WC)

    # In-kernel zero row padding; width padding is baked into the banded
    # weights, so no wrapper-side jnp.pad / extra HBM pass is needed.
    zero_row = jnp.zeros((1, WC), jnp.float32)
    xp_ref[PAD - 1:PAD, :] = zero_row                 # top border row
    xp_ref[PAD + H:PAD + H + 1, :] = zero_row         # bottom border row
    xp_ref[PAD:PAD + H, :] = x2d                      # tile-aligned bulk store

    # Center tap (kh=1): no row shift -> use x2d directly (keeps it in vregs).
    # Bias + residual are folded into its epilogue add.
    acc = jnp.dot(x2d, m_ref[1], preferred_element_type=jnp.float32)
    acc = acc + (x2d + b_ref[...])
    # Shifted taps (kh=0 / kh=2) read the row-padded scratch.
    acc = acc + jnp.dot(xp_ref[PAD - 1:PAD - 1 + H, :], m_ref[0],
                        preferred_element_type=jnp.float32)
    acc = acc + jnp.dot(xp_ref[PAD + 1:PAD + 1 + H, :], m_ref[2],
                        preferred_element_type=jnp.float32)

    # ReLU, all lane-dense.
    o_ref[0] = jnp.maximum(acc, 0.0).astype(o_ref.dtype)


def _banded_conv_weights(w_hwio, W):
    """Fold the 3 kw taps (and implicit zero width-padding) of a 3x3 'same'
    conv into banded (W*C, W*C) matrices, one per kernel row kh.

    m[kh, w_in*C + ci, w_out*C + co] = w_hwio[kh, w_in - w_out + 1, ci, co]
    when 0 <= w_in - w_out + 1 <= 2, else 0.
    """
    C = w_hwio.shape[2]
    wi = jnp.arange(W)[:, None]          # input column  w'
    wo = jnp.arange(W)[None, :]          # output column w
    kw = wi - wo + 1                     # (W, W)
    valid = (kw >= 0) & (kw <= 2)
    g = w_hwio[:, jnp.clip(kw, 0, 2)]                       # (3, W, W, C, C)
    g = jnp.where(valid[None, :, :, None, None], g, 0.0)
    # reorder to [kh, w_in, ci, w_out, co] and flatten to (3, W*C, W*C).
    return g.transpose(0, 1, 3, 2, 4).reshape(3, W * C, W * C)


def residual_custom_block(x_nhwc, w_last_hwio, b_last):
    """out = relu(conv3x3_same(x, w_last, b_last) + x).

    Only the LAST conv block of the PyTorch module contributes to the output
    (earlier blocks are dead code), so only its parameters are taken.
    """
    B, H, W, C = x_nhwc.shape
    WC = W * C

    x2 = x_nhwc.reshape(B, H, WC)                          # lane-dense view
    m = _banded_conv_weights(w_last_hwio, W)               # (3, WC, WC)
    b_flat = jnp.tile(b_last.reshape(1, C), (1, W))        # (1, WC)

    kernel = functools.partial(_residual_block_kernel, H=H, WC=WC)
    out2 = pl.pallas_call(
        kernel,
        out_shape=jax.ShapeDtypeStruct((B, H, WC), x_nhwc.dtype),
        grid_spec=pltpu.PrefetchScalarGridSpec(
            num_scalar_prefetch=0,
            grid=(B,),
            in_specs=[
                pl.BlockSpec((1, H, WC), lambda bi: (bi, 0, 0)),
                pl.BlockSpec((3, WC, WC), lambda bi: (0, 0, 0)),
                pl.BlockSpec((1, WC), lambda bi: (0, 0)),
            ],
            out_specs=pl.BlockSpec((1, H, WC), lambda bi: (bi, 0, 0)),
            scratch_shapes=[pltpu.VMEM((H + 16, WC), jnp.float32)],
        ),
        compiler_params=pltpu.CompilerParams(
            dimension_semantics=("parallel",)),
    )(x2, m, b_flat)
    return out2.reshape(B, H, W, C)


def _reference(x_nhwc, w0, b0, w1, b1):
    def conv(x, w, b):
        y = lax.conv_general_dilated(
            x, w, window_strides=(1, 1), padding="SAME",
            dimension_numbers=("NHWC", "HWIO", "NHWC"))
        return y + b.reshape(1, 1, 1, -1)
    out = jnp.maximum(conv(x_nhwc, w0, b0), 0.0)   # block 0: computed & discarded
    out = conv(x_nhwc, w1, b1)                     # block 1 (last, no ReLU)
    return jnp.maximum(out + x_nhwc, 0.0)


if __name__ == "__main__":
    B, C, H, W = 2, 8, 16, 16                      # W*C = 128 -> lane-dense
    key = jax.random.PRNGKey(0)
    kx, k0, kb0, k1, kb1 = jax.random.split(key, 5)

    # PyTorch-style NCHW input, transposed to the kernel's NHWC layout.
    x_nchw = jax.random.normal(kx, (B, C, H, W), jnp.float32)
    x_nhwc = jnp.transpose(x_nchw, (0, 2, 3, 1))

    # Two Conv2d(C, C, 3, padding=1) blocks (HWIO), mirroring the module
    # config.  Block 0's output is discarded by the PyTorch forward, so its
    # parameters are intentionally NOT passed to the kernel (dead code).
    w0 = jax.random.normal(k0, (3, 3, C, C), jnp.float32) * 0.1
    b0 = jax.random.normal(kb0, (1, C), jnp.float32) * 0.1
    w1 = jax.random.normal(k1, (3, 3, C, C), jnp.float32) * 0.1
    b1 = jax.random.normal(kb1, (1, C), jnp.float32) * 0.1

    out_nhwc = jax.block_until_ready(residual_custom_block(x_nhwc, w1, b1))
    ref_nhwc = _reference(x_nhwc, w0, b0, w1, b1)
    assert out_nhwc.shape == (B, H, W, C) and out_nhwc.dtype == jnp.float32
    assert jnp.allclose(out_nhwc, ref_nhwc, atol=2e-4, rtol=2e-4)

    # Back to PyTorch NCHW convention for parity with the nn.Module output.
    out_nchw = jnp.transpose(out_nhwc, (0, 3, 1, 2))
    assert out_nchw.shape == (B, C, H, W)
    print("KERNEL_OK")
</pallas_src>

<mosaic_0001>
module attributes {stable_mosaic.version = 11 : i64} {
  func.func @_residual_block_kernel(%arg0: i32, %arg1: memref<1x16x128xf32, #tpu.memory_space<vmem>>, %arg2: memref<3x128x128xf32, #tpu.memory_space<vmem>>, %arg3: memref<1x128xf32, #tpu.memory_space<vmem>>, %arg4: memref<1x16x128xf32, #tpu.memory_space<vmem>>, %arg5: memref<32x128xf32, #tpu.memory_space<vmem>>) attributes {dimension_semantics = [#tpu.dimension_semantics<parallel>], iteration_bounds = array<i64: 2>, scalar_prefetch = 0 : i64, scratch_operands = 1 : i64, tpu.core_type = #tpu.core_type<tc>, window_params = [{transform_indices = @transform_0, window_bounds = array<i64: 1, 16, 128>}, {pipeline_mode = #tpu.pipeline_mode<synchronous>, transform_indices = @transform_1, window_bounds = array<i64: 3, 128, 128>}, {pipeline_mode = #tpu.pipeline_mode<synchronous>, transform_indices = @transform_2, window_bounds = array<i64: 1, 128>}, {transform_indices = @transform_3, window_bounds = array<i64: 1, 16, 128>}]} {
    %c0 = arith.constant 0 : index
    %c0_0 = arith.constant 0 : index
    %c0_1 = arith.constant 0 : index
    %0 = vector.load %arg1[%c0, %c0_0, %c0_1] : memref<1x16x128xf32, #tpu.memory_space<vmem>>, vector<1x16x128xf32>
    %1 = vector.shape_cast %0 : vector<1x16x128xf32> to vector<16x128xf32>
    %cst = arith.constant 0.000000e+00 : f32
    %2 = vector.broadcast %cst : f32 to vector<1x128xf32>
    %c7 = arith.constant 7 : index
    %c0_2 = arith.constant 0 : index
    %3 = vector.load %arg5[%c7, %c0_2] : memref<32x128xf32, #tpu.memory_space<vmem>>, vector<1x128xf32>
    tpu.vector_store %arg5[%c7, %c0_2], %2 {strides = array<i32>} : memref<32x128xf32, #tpu.memory_space<vmem>>, vector<1x128xf32>,
    %c24 = arith.constant 24 : index
    %c0_3 = arith.constant 0 : index
    %4 = vector.load %arg5[%c24, %c0_3] : memref<32x128xf32, #tpu.memory_space<vmem>>, vector<1x128xf32>
    tpu.vector_store %arg5[%c24, %c0_3], %2 {strides = array<i32>} : memref<32x128xf32, #tpu.memory_space<vmem>>, vector<1x128xf32>,
    %c8 = arith.constant 8 : index
    %c0_4 = arith.constant 0 : index
    %5 = vector.load %arg5[%c8, %c0_4] : memref<32x128xf32, #tpu.memory_space<vmem>>, vector<16x128xf32>
    tpu.vector_store %arg5[%c8, %c0_4], %1 {strides = array<i32>} : memref<32x128xf32, #tpu.memory_space<vmem>>, vector<16x128xf32>,
    %c1 = arith.constant 1 : index
    %c0_5 = arith.constant 0 : index
    %c0_6 = arith.constant 0 : index
    %6 = vector.load %arg2[%c1, %c0_5, %c0_6] : memref<3x128x128xf32, #tpu.memory_space<vmem>>, vector<1x128x128xf32>
    %7 = vector.shape_cast %6 : vector<1x128x128xf32> to vector<128x128xf32>
    %cst_7 = arith.constant dense<0.000000e+00> : vector<16x128xf32>
    %8 = tpu.matmul %1, %7, %cst_7 {dimension_numbers = #tpu.dot_dimension_numbers<[1], [0], [0], [1], [0, 0, 1, 1], [], []>} : vector<16x128xf32>, vector<128x128xf32>, vector<16x128xf32> -> vector<16x128xf32>
    %c0_8 = arith.constant 0 : index
    %c0_9 = arith.constant 0 : index
    %9 = vector.load %arg3[%c0_8, %c0_9] : memref<1x128xf32, #tpu.memory_space<vmem>>, vector<1x128xf32>
    %10 = vector.broadcast %9 : vector<1x128xf32> to vector<16x128xf32>
    %11 = arith.addf %1, %10 : vector<16x128xf32>
    %12 = arith.addf %8, %11 : vector<16x128xf32>
    %c7_10 = arith.constant 7 : index
    %c0_11 = arith.constant 0 : index
    %13 = vector.load %arg5[%c7_10, %c0_11] : memref<32x128xf32, #tpu.memory_space<vmem>>, vector<16x128xf32>
    %c0_12 = arith.constant 0 : index
    %c0_13 = arith.constant 0 : index
    %c0_14 = arith.constant 0 : index
    %14 = vector.load %arg2[%c0_12, %c0_13, %c0_14] : memref<3x128x128xf32, #tpu.memory_space<vmem>>, vector<1x128x128xf32>
    %15 = vector.shape_cast %14 : vector<1x128x128xf32> to vector<128x128xf32>
    %cst_15 = arith.constant dense<0.000000e+00> : vector<16x128xf32>
    %16 = tpu.matmul %13, %15, %cst_15 {dimension_numbers = #tpu.dot_dimension_numbers<[1], [0], [0], [1], [0, 0, 1, 1], [], []>} : vector<16x128xf32>, vector<128x128xf32>, vector<16x128xf32> -> vector<16x128xf32>
    %17 = arith.addf %12, %16 : vector<16x128xf32>
    %c9 = arith.constant 9 : index
    %c0_16 = arith.constant 0 : index
    %18 = vector.load %arg5[%c9, %c0_16] : memref<32x128xf32, #tpu.memory_space<vmem>>, vector<16x128xf32>
    %c2 = arith.constant 2 : index
    %c0_17 = arith.constant 0 : index
    %c0_18 = arith.constant 0 : index
    %19 = vector.load %arg2[%c2, %c0_17, %c0_18] : memref<3x128x128xf32, #tpu.memory_space<vmem>>, vector<1x128x128xf32>
    %20 = vector.shape_cast %19 : vector<1x128x128xf32> to vector<128x128xf32>
    %cst_19 = arith.constant dense<0.000000e+00> : vector<16x128xf32>
    %21 = tpu.matmul %18, %20, %cst_19 {dimension_numbers = #tpu.dot_dimension_numbers<[1], [0], [0], [1], [0, 0, 1, 1], [], []>} : vector<16x128xf32>, vector<128x128xf32>, vector<16x128xf32> -> vector<16x128xf32>
    %22 = arith.addf %17, %21 : vector<16x128xf32>
    %cst_20 = arith.constant 0.000000e+00 : f32
    %23 = vector.broadcast %cst_20 : f32 to vector<16x128xf32>
    %24 = arith.maximumf %22, %23 : vector<16x128xf32>
    %c0_21 = arith.constant 0 : index
    %c0_22 = arith.constant 0 : index
    %c0_23 = arith.constant 0 : index
    %25 = vector.load %arg4[%c0_21, %c0_22, %c0_23] : memref<1x16x128xf32, #tpu.memory_space<vmem>>, vector<1x16x128xf32>
    %26 = vector.shape_cast %25 : vector<1x16x128xf32> to vector<16x128xf32>
    %27 = vector.shape_cast %24 : vector<16x128xf32> to vector<1x16x128xf32>
    tpu.vector_store %arg4[%c0_21, %c0_22, %c0_23], %27 {strides = array<i32>} : memref<1x16x128xf32, #tpu.memory_space<vmem>>, vector<1x16x128xf32>,
    return
  }
  func.func @transform_0(%arg0: i32) -> (i32, i32, i32) {
    %c0_i32 = arith.constant 0 : i32
    %c0_i32_0 = arith.constant 0 : i32
    %c0_i32_1 = arith.constant 0 : i32
    return %arg0, %c0_i32, %c0_i32_0 : i32, i32, i32
  }
  func.func @transform_1(%arg0: i32) -> (i32, i32, i32) {
    %c0_i32 = arith.constant 0 : i32
    %c0_i32_0 = arith.constant 0 : i32
    %c0_i32_1 = arith.constant 0 : i32
    %c0_i32_2 = arith.constant 0 : i32
    return %c0_i32, %c0_i32_0, %c0_i32_1 : i32, i32, i32
  }
  func.func @transform_2(%arg0: i32) -> (i32, i32) {
    %c0_i32 = arith.constant 0 : i32
    %c0_i32_0 = arith.constant 0 : i32
    %c0_i32_1 = arith.constant 0 : i32
    return %c0_i32, %c0_i32_0 : i32, i32
  }
  func.func @transform_3(%arg0: i32) -> (i32, i32, i32) {
    %c0_i32 = arith.constant 0 : i32
    %c0_i32_0 = arith.constant 0 : i32
    %c0_i32_1 = arith.constant 0 : i32
    return %arg0, %c0_i32, %c0_i32_0 : i32, i32, i32
  }
}

</mosaic_0001>

<bundles_post_ra>
// kernel: tpu_custom_call.1
= control target key start
LH: loop header
LB: loop body
LE: loop exit
PB: predicated region body
PF: predicated region fallthrough
CT: control target
= control target key end

     0   :  { %8 = vsyncpa [#allocation4], 0  ;;  %s1199_s0 = inlined_call_operand.hbm [shape: f32[2,16,128], index: 0, kind: input, shape index: {}]   ;;  %s1200_s1 = inlined_call_operand.hbm [shape: f32[3,128,128], index: 1, kind: input, shape index: {}]   ;;  %s1201_s2 = inlined_call_operand.vmem [shape: f32[1,128], index: 2, kind: input, shape index: {}]   ;;  %s1202_s3 = inlined_call_operand.hbm [shape: f32[2,16,128], index: 3, kind: output, shape index: {}]  }
   0x1   :  { %10 = vsyncpa [#allocation4 + $0x1], 0 }
   0x2   :  { %11 = vsyncpa [#allocation7], 0 }
   0x3   :  { %12 = vsyncpa [#allocation5], 0 }
   0x4   :  { %14 = vsyncpa [#allocation5 + $0x1], 0  ;;  %s995_s12 = smov 0   ;;  %s997_s13 = smov 0  }
   0x5   :  { %s999_s14 = smov 0   ;;  %s1001_s15 = smov 0  }
   0x6 LB: > { %s1016_s16 = sadd.s32 4294967295, %s965_s15   ;;  %s603_s17 = sadd.s32 4294967294, %s965_s15   ;;  %s965_s15 = sphi %s1001_s15, %s1224_s15   ;;  %s961_s14 = sphi %s999_s14, %s1223_s14   ;;  %s957_s13 = sphi %s997_s13, %s1222_s13   ;;  %s953_s12 = sphi %s995_s12, %s1221_s12  }
   0x7   : > { %p40_p0 = scmp.ne.s32.totalorder %s957_s13, %s953_s12  ;;  %p1203_p1 = scmp.eq.s32.totalorder %s1016_s16, 0 }
   0x8   : > { %p112_p3 = scmp.eq.s32.totalorder %s603_s17, 1  ;;  %p604_p5 = scmp.ge.s32.totalorder %s965_s15, 1 }
   0x9   : > { %p1025_p4 = por %p1203_p1, %p40_p0  ;;  %p119_p7 = scmp.lt.s32.totalorder %s965_s15, 3 }
   0xa   : > { %p1030_p6 = por %p112_p3, %p40_p0  ;;  %s967_s21 = smov [#allocation6]  }
   0xb   : > { %s1207_s18 = scalar_select %p1025_p4, 1, 0 }
   0xc   : > { %s1208_s19 = scalar_select %p1030_p6, 1, 0 }
   0xd   : > { %p1035_p8 = pnand %p604_p5, %p119_p7  ;;  %s131_s22 = sshll.u32 %s967_s21, 4  ;;  %s132_s22 = int_to_ptr.vmem [resolvable:$true] %s131_s22 }
   0xe   : > { %s1049_s24 = sadd.s32 1, %s965_s15   ;;  %s27_s25 = sadd.s32 1, %s961_s14 }
   0xf   : > { %s1209_s20 = scalar_select %p1035_p8, 1, 0 }
  0x10   : > { %p789_p9 = pneg %p1035_p8  ;;  %s24_s26 = ssub.s32 %s965_s15, %s1049_s24 }
  0x11   : > { %s854_s27 = scalar_lea.vmem %s132_s22, 6144  ;;  %p862_p5 = scmp.lt.s32.totalorder %s132_s22, %s132_s22 }
  0x12   : > { %p1044_p11 = pnand %p789_p9, %p1203_p1  ;;  %p855_p13 = scmp.ne.s32.totalorder %s132_s22, %s854_s27 }
  0x13   : > { %p863_p7 = scmp.lt.s32.totalorder %s854_s27, %s854_s27 }
  0x14   : > { %p845_p12 = pneg %p1044_p11 }
  0x15   : > { %p864_p10 = por %p863_p7, %p862_p5 }
  0x16   : > { %p857_p0 = pnand %p855_p13, %p845_p12 }
  0x18   : > { %p858_p3 = pneg %p857_p0 }
  0x1a   : > { %p865_p2 = pnand %p864_p10, %p858_p3 }
  0x1c   : > { %868 = shalt.err (!%p865_p2)
}
  0x1d   : > { %s968_s28 = smov 128   ;;  %s969_s29 = smov 8  }
  0x1e   : > { %792 = dma.hbm_to_vmem [thread:$0]  (!%p1044_p11), %s1200_s1, 6144, %s132_s22, [#allocation7], %s968_s28, %s968_s28, %s969_s29  }
  0x1f   : > { %p25_p2 = scmp.eq.s32.totalorder %s24_s26, 0  ;;  %p34_p9 = scmp.ne.s32.totalorder %s961_s14, %s957_s13 }
  0x20   : > { %p35_p10 = scmp.eq.s32.totalorder %s965_s15, 0  ;;  %p802_p12 = scmp.lt.s32.totalorder %s965_s15, 2 }
  0x21   : > { %s1069_s5 = scalar_select %p25_p2, %s961_s14, %s27_s25  }
  0x22   : > { %p36_p13 = por %p35_p10, %p34_p9  ;;  %p1211_p0 = scmp.eq.s32.totalorder %s1016_s16, 1 }
  0x23   : > { %s148_s7 = sand.u32 1, %s961_s14   ;;  %s620_s8 = sshll.u32 %s965_s15, 8 }
  0x24   : > { %p1073_p3 = por %p1211_p0, %p34_p9  ;;  %s607_s9 = sshll.u32 %s148_s7, 4 }
  0x25   : > { %s1082_s17 = scalar_lea.hbm %s1199_s0, %s620_s8  ;;  %s152_s21 = scalar_lea.vmem [#allocation3], %s607_s9 }
  0x26   : > { %s1212_s6 = scalar_select %p1073_p3, 1, 0 }
  0x27   : > { %s159_s22 = sshll.u32 %s152_s21, 4  ;;  %p1084_p11 = pnand %p802_p12, %p36_p13  ;;  %s1088_s22 = int_to_ptr.vmem [resolvable:$true] %s159_s22 }
  0x28   : > { %s1090_s25 = scalar_lea.sflag [#allocation4], %s148_s7  ;;  %s869_s26 = scalar_lea.hbm %s1082_s17, 256 }
  0x29   : > { %p870_p5 = scmp.ne.s32.totalorder %s1082_s17, %s869_s26  ;;  %p871_p7 = pneg %p1084_p11 }
  0x2a   : > { %s874_s4 = scalar_lea.hbm %s1199_s0, 512  ;;  %p875_p10 = scmp.lt.s32.totalorder %s1082_s17, %s1199_s0 }
  0x2b   : > { %p872_p2 = pnand %p871_p7, %p870_p5  ;;  %p876_p12 = scmp.lt.s32.totalorder %s874_s4, %s869_s26 }
  0x2d   : > { %p873_p9 = pneg %p872_p2  ;;  %p877_p13 = por %p876_p12, %p875_p10 }
  0x2f   : > { %p878_p0 = pnand %p877_p13, %p873_p9 }
  0x31   : > { %881 = shalt.err (!%p878_p0)
}
  0x32   : > { %s882_s7 = scalar_lea.vmem %s1088_s22, 256  ;;  %s970_s10 = smov [#allocation3]  }
  0x33   : > { %p883_p1 = scmp.ne.s32.totalorder %s1088_s22, %s882_s7  ;;  %s887_s11 = sshll.u32 %s970_s10, 4  ;;  %s888_s11 = int_to_ptr.vmem [resolvable:$false] %s887_s11 }
  0x34   : > { %s889_s21 = scalar_lea.vmem %s888_s11, 512  ;;  %p890_p2 = scmp.lt.s32.totalorder %s1088_s22, %s888_s11 }
  0x35   : > { %p885_p6 = pnand %p883_p1, %p871_p7  ;;  %p891_p3 = scmp.lt.s32.totalorder %s889_s21, %s882_s7 }
  0x37   : > { %p886_p5 = pneg %p885_p6  ;;  %p892_p4 = por %p891_p3, %p890_p2 }
  0x39   : > { %p893_p8 = pnand %p892_p4, %p886_p5 }
  0x3b   : > { %896 = shalt.err (!%p893_p8)
}
  0x3c   : > { %796 = dma.hbm_to_vmem [thread:$0]  (!%p1084_p11), %s1082_s17, 256, %s1088_s22, %s1090_s25, %s968_s28, %s968_s28, %s969_s29  }
  0x3d   : > { %p1214_p1 = scmp.ne.s32.totalorder %s1209_s20, 0 }
  0x3e   : > { %s1117_s26 = sand.u32 (!%p1214_p1), 1, %s957_s13   ;;  %p1215_p4 = scmp.ne.s32.totalorder (!%p1214_p1), %s1207_s18, 0 }
  0x3f   : > { %171 = sbr.rel (%p1214_p1) target bundleno = 351 (0x15f), region = 32  ;;  %s611_s27 = sshll.u32 (!%p1214_p1), %s1117_s26, 4 }
  0x40   : > { %s174_s30 = scalar_lea.sflag (!%p1214_p1), [#allocation4], %s1117_s26  ;;  %s1123_s23 = scalar_lea.vmem (!%p1214_p1), [#allocation3], %s611_s27 }
  0x44   : > { %940 = dma.done.wait (%p1215_p4), %s174_s30, 256  }
  0x45   : > { %942 = vsyncadd (%p1215_p4), %s174_s30, 4294967040  ;;  %p1216_p6 = scmp.eq.s32.totalorder %s1016_s16, 0 }
  0x47   : > { %944 = dma.done.wait (%p1216_p6), [#allocation7], 6144   ;;  %p1217_p8 = pmov %p1216_p6 }
  0x48   : > { %v971_v0 = vmov 0.0   ;;  %v226_v1 = vld [vmem:[#allocation6 + $0xf8] sm:$0xff]  ;;  %v225_v2 = vld [vmem:[#allocation6 + $0xf0] sm:$0xff]  ;;  %v224_v5 = vld [vmem:[#allocation6 + $0xe8] sm:$0xff]  ;;  %s203_s28 = scalar_lea.vmem [#allocation8], %s611_s27  ;;  %s621_s17 = sshll.u32 %s1016_s16, 8 }
  0x49   : > { %946 = vsyncadd (%p1217_p8), [#allocation7], 4294961152  ;;  %206 = vst [vmem:[#allocation2 + $0x7] sm:$0x1] %v971_v0  ;;  %v328_v3 = vld [vmem:[#allocation6 + $0x78] sm:$0xff]  ;;  %676 = vmatprep.subr.mxu0 %v226_v1  ;;  %v327_v4 = vld [vmem:[#allocation6 + $0x70] sm:$0xff]  ;;  %s1156_s4 = scalar_lea.hbm %s1202_s3, %s621_s17 }
  0x4a   : > { %207 = vst [vmem:[#allocation2 + $0x18] sm:$0x1] %v971_v0  ;;  %711 = vmatprep.subr.mxu1 %v328_v3  ;;  %677 = vmatpush3.msra.mxu0 %v226_v1  ;;  %v326_v6 = vld [vmem:[#allocation6 + $0x68] sm:$0xff]  ;;  %v223_v7 = vld [vmem:[#allocation6 + $0xe0] sm:$0xff]  ;;  %v222_v9 = vld [vmem:[#allocation6 + $0xd8] sm:$0xff]  ;;  %s520_s29 = sshll.u32 %s203_s28, 4  ;;  %s1151_s29 = int_to_ptr.vmem [resolvable:$true] %s520_s29 }
  0x4b   : > { %712 = vmatpush3.msra.mxu1 %v328_v3  ;;  %678 = vmatprep.subr.mxu0 %v225_v2  ;;  %v325_v8 = vld [vmem:[#allocation6 + $0x60] sm:$0xff]  ;;  %v324_v10 = vld [vmem:[#allocation6 + $0x58] sm:$0xff]  ;;  %v221_v11 = vld [vmem:[#allocation6 + $0xd0] sm:$0xff]  ;;  %s507_s8 = scalar_lea.sflag [#allocation5], %s1117_s26  ;;  %s897_s9 = scalar_lea.vmem %s1151_s29, 256 }
  0x4c   : > { %713 = vmatprep.subr.mxu1 %v327_v4  ;;  %679 = vmatpush3.msra.mxu0 %v225_v2  ;;  %v323_v12 = vld [vmem:[#allocation6 + $0x50] sm:$0xff]  ;;  %v220_v13 = vld [vmem:[#allocation6 + $0xc8] sm:$0xff]  ;;  %v219_v17 = vld [vmem:[#allocation6 + $0xc0] sm:$0xff]  ;;  %p898_p3 = scmp.ne.s32.totalorder %s1151_s29, %s897_s9  ;;  %p1218_p11 = scmp.ne.s32.totalorder %s1212_s6, 0 }
  0x4d   : > { %714 = vmatpush3.msra.mxu1 %v327_v4  ;;  %680 = vmatprep.subr.mxu0 %v224_v5  ;;  %v322_v14 = vld [vmem:[#allocation6 + $0x48] sm:$0xff]  ;;  %v1134_v15 = vld [vmem:[%s1123_s23] sm:$0xff]  ;;  %v218_v19 = vld [vmem:[#allocation6 + $0xb8] sm:$0xff]  ;;  %s972_s16 = smov [#allocation8]  }
  0x4e   : > { %715 = vmatprep.subr.mxu1 %v326_v6  ;;  %681 = vmatpush3.msra.mxu0 %v224_v5  ;;  %v1137_v16 = vld [vmem:[%s1123_s23 + $0x8] sm:$0xff]  ;;  %208 = vst [vmem:[#allocation2 + $0x8] sm:$0xff] %v1134_v15  ;;  %v321_v18 = vld [vmem:[#allocation6 + $0x40] sm:$0xff]  ;;  %v217_v21 = vld [vmem:[#allocation6 + $0xb0] sm:$0xff]  ;;  %p899_p7 = pnand %p898_p3, %p1218_p11  ;;  %s901_s7 = sshll.u32 %s972_s16, 4  ;;  %s902_s7 = int_to_ptr.vmem [resolvable:$false] %s901_s7 }
  0x4f   : > { %716 = vmatpush3.msra.mxu1 %v326_v6  ;;  %682 = vmatprep.subr.mxu0 %v223_v7  ;;  %209 = vst [vmem:[#allocation2 + $0x10] sm:$0xff] %v1137_v16  ;;  %v320_v20 = vld [vmem:[#allocation6 + $0x38] sm:$0xff]  ;;  %v319_v22 = vld [vmem:[#allocation6 + $0x30] sm:$0xff]  ;;  %v216_v23 = vld [vmem:[#allocation6 + $0xa8] sm:$0xff]  ;;  %s903_s10 = scalar_lea.vmem %s902_s7, 512  ;;  %p904_p10 = scmp.lt.s32.totalorder %s1151_s29, %s902_s7 }
  0x50   : > { %717 = vmatprep.subr.mxu1 %v325_v8  ;;  %683 = vmatpush3.msra.mxu0 %v223_v7  ;;  %v318_v24 = vld [vmem:[#allocation6 + $0x28] sm:$0xff]  ;;  %v215_v25 = vld [vmem:[#allocation6 + $0xa0] sm:$0xff]  ;;  %v214_v27 = vld [vmem:[#allocation6 + $0x98] sm:$0xff]  ;;  %p900_p9 = pneg %p899_p7  ;;  %p905_p12 = scmp.lt.s32.totalorder %s903_s10, %s897_s9 }
  0x51   : > { %718 = vmatpush3.msra.mxu1 %v325_v8  ;;  %684 = vmatprep.subr.mxu0 %v222_v9  ;;  %v317_v26 = vld [vmem:[#allocation6 + $0x20] sm:$0xff]  ;;  %v316_v28 = vld [vmem:[#allocation6 + $0x18] sm:$0xff]  ;;  %v213_v29 = vld [vmem:[#allocation6 + $0x90] sm:$0xff] }
  0x52   : > { %719 = vmatprep.subr.mxu1 %v324_v10  ;;  %685 = vmatpush3.msra.mxu0 %v222_v9  ;;  %v315_v30 = vld [vmem:[#allocation6 + $0x10] sm:$0xff]  ;;  %v212_v31 = vld [vmem:[#allocation6 + $0x88] sm:$0xff]  ;;  %v211_v33 = vld [vmem:[#allocation6 + $0x80] sm:$0xff]  ;;  %p906_p13 = por %p905_p12, %p904_p10 }
  0x53   : > { %720 = vmatpush3.msra.mxu1 %v324_v10  ;;  %686 = vmatprep.subr.mxu0 %v221_v11  ;;  %v314_v32 = vld [vmem:[#allocation6 + $0x8] sm:$0xff]  ;;  %v313_v34 = vld [vmem:[#allocation6] sm:$0xff]  ;;  %v424_v35 = vld [vmem:[#allocation6 + $0x178] sm:$0xff] }
  0x54   : > { %721 = vmatprep.subr.mxu1 %v323_v12  ;;  %687 = vmatpush3.msra.mxu0 %v221_v11  ;;  %v423_v38 = vld [vmem:[#allocation6 + $0x170] sm:$0xff]  ;;  %v422_v40 = vld [vmem:[#allocation6 + $0x168] sm:$0xff]  ;;  %v421_v41 = vld [vmem:[#allocation6 + $0x160] sm:$0xff]  ;;  %p907_p0 = pnand %p906_p13, %p900_p9 }
  0x55   : > { %722 = vmatpush3.msra.mxu1 %v323_v12  ;;  %688 = vmatprep.subr.mxu0 %v220_v13  ;;  %v311_v36 = vld [vmem:[#allocation2 + $0x7] sm:$0xff]  ;;  %v420_v42 = vld [vmem:[#allocation6 + $0x158] sm:$0xff]  ;;  %v419_v43 = vld [vmem:[#allocation6 + $0x150] sm:$0xff] }
  0x56   : > { %723 = vmatprep.subr.mxu1 %v322_v14  ;;  %689 = vmatpush3.msra.mxu0 %v220_v13  ;;  %v312_v37 = vld [vmem:[#allocation2 + $0xf] sm:$0xff]  ;;  %v417_v45 = vld [vmem:[#allocation6 + $0x140] sm:$0xff]  ;;  %v416_v46 = vld [vmem:[#allocation6 + $0x138] sm:$0xff] }
  0x57   : > { %724 = vmatpush3.msra.mxu1 %v322_v14  ;;  %690 = vmatprep.subr.mxu0 %v219_v17  ;;  %v406_v39 = vld [vmem:[#allocation2 + $0x9] sm:$0xff]  ;;  %v413_v49 = vld [vmem:[#allocation6 + $0x120] sm:$0xff]  ;;  %v412_v50 = vld [vmem:[#allocation6 + $0x118] sm:$0xff] }
  0x58   : > { %725 = vmatprep.subr.mxu1 %v321_v18  ;;  %691 = vmatpush3.msra.mxu0 %v219_v17  ;;  %v418_v44 = vld [vmem:[#allocation6 + $0x148] sm:$0xff]  ;;  %v415_v47 = vld [vmem:[#allocation6 + $0x130] sm:$0xff]  ;;  %v409_v53 = vld [vmem:[#allocation6 + $0x100] sm:$0xff] }
  0x59   : > { %726 = vmatpush3.msra.mxu1 %v321_v18  ;;  %692 = vmatprep.subr.mxu0 %v218_v19  ;;  %v414_v48 = vld [vmem:[#allocation6 + $0x128] sm:$0xff]  ;;  %v411_v51 = vld [vmem:[#allocation6 + $0x110] sm:$0xff]  ;;  %v614_v55 = vld [vmem:[%s1201_s2] ss:$0 sm:$0xff] }
  0x5a   : > { %727 = vmatprep.subr.mxu1 %v320_v20  ;;  %693 = vmatpush3.msra.mxu0 %v218_v19  ;;  %v410_v52 = vld [vmem:[#allocation6 + $0x108] sm:$0xff]  ;;  %v407_v54 = vld [vmem:[#allocation2 + $0x11] sm:$0xff]  ;;  %v235_v57 = vadd.f32 %v614_v55, %v1137_v16  ;;  %v234_v58 = vadd.f32 %v614_v55, %v1134_v15 }
  0x5b   : > { %728 = vmatpush3.msra.mxu1 %v320_v20  ;;  %694 = vmatprep.subr.mxu0 %v217_v21 }
  0x5c   : > { %729 = vmatprep.subr.mxu1 %v319_v22  ;;  %695 = vmatpush3.msra.mxu0 %v217_v21 }
  0x5d   : > { %730 = vmatpush3.msra.mxu1 %v319_v22  ;;  %696 = vmatprep.subr.mxu0 %v216_v23 }
  0x5e   : > { %731 = vmatprep.subr.mxu1 %v318_v24  ;;  %697 = vmatpush3.msra.mxu0 %v216_v23 }
  0x5f   : > { %732 = vmatpush3.msra.mxu1 %v318_v24  ;;  %698 = vmatprep.subr.mxu0 %v215_v25 }
  0x60   : > { %733 = vmatprep.subr.mxu1 %v317_v26  ;;  %699 = vmatpush3.msra.mxu0 %v215_v25 }
  0x61   : > { %734 = vmatpush3.msra.mxu1 %v317_v26  ;;  %700 = vmatprep.subr.mxu0 %v214_v27 }
  0x62   : > { %735 = vmatprep.subr.mxu1 %v316_v28  ;;  %701 = vmatpush3.msra.mxu0 %v214_v27 }
  0x63   : > { %736 = vmatpush3.msra.mxu1 %v316_v28  ;;  %702 = vmatprep.subr.mxu0 %v213_v29 }
  0x64   : > { %737 = vmatprep.subr.mxu1 %v315_v30  ;;  %703 = vmatpush3.msra.mxu0 %v213_v29 }
  0x65   : > { %738 = vmatpush3.msra.mxu1 %v315_v30  ;;  %704 = vmatprep.subr.mxu0 %v212_v31 }
  0x66   : > { %739 = vmatprep.subr.mxu1 %v314_v32  ;;  %705 = vmatpush3.msra.mxu0 %v212_v31 }
  0x67   : > { %708 = vmatprep.mubr.f32.mxu0 %v1134_v15  ;;  %706 = vmatprep.subr.mxu0 %v211_v33 }
  0x68   : > { %740 = vmatpush3.msra.mxu1 %v314_v32  ;;  %707 = vmatpush3.msra.mxu0 %v211_v33 }
  0x69   : > { %741 = vmatprep.subr.mxu1 %v313_v34  ;;  %709 = vmatmul.mubr.f32.vlgmr.msra.gmra.mxu0 %v1137_v16 }
  0x6a   : > { %746 = vmatprep.subr.mxu0 %v424_v35  ;;  %742 = vmatpush3.msra.mxu1 %v313_v34 }
  0x6b   : > { %743 = vmatprep.mubr.f32.mxu1 %v311_v36  ;;  %747 = vmatpush3.msra.mxu0 %v424_v35 }
  0x6c   : > { %744 = vmatmul.mubr.f32.vlgmr.msra.gmra.mxu1 %v312_v37  ;;  %748 = vmatprep.subr.mxu0 %v423_v38 }
  0x6d   : > { %778 = vmatprep.mubr.f32.mxu0 %v406_v39  ;;  %749 = vmatpush3.msra.mxu0 %v423_v38 }
  0x6e   : > { %750 = vmatprep.subr.mxu0 %v422_v40 }
  0x6f   : > { %751 = vmatpush3.msra.mxu0 %v422_v40 }
  0x70   : > { %752 = vmatprep.subr.mxu0 %v421_v41 }
  0x71   : > { %753 = vmatpush3.msra.mxu0 %v421_v41 }
  0x72   : > { %754 = vmatprep.subr.mxu0 %v420_v42 }
  0x73   : > { %755 = vmatpush3.msra.mxu0 %v420_v42 }
  0x74   : > { %756 = vmatprep.subr.mxu0 %v419_v43 }
  0x75   : > { %757 = vmatpush3.msra.mxu0 %v419_v43 }
  0x76   : > { %758 = vmatprep.subr.mxu0 %v418_v44 }
  0x77   : > { %759 = vmatpush3.msra.mxu0 %v418_v44 }
  0x78   : > { %760 = vmatprep.subr.mxu0 %v417_v45 }
  0x79   : > { %761 = vmatpush3.msra.mxu0 %v417_v45 }
  0x7a   : > { %762 = vmatprep.subr.mxu0 %v416_v46 }
  0x7b   : > { %763 = vmatpush3.msra.mxu0 %v416_v46 }
  0x7c   : > { %764 = vmatprep.subr.mxu0 %v415_v47 }
  0x7d   : > { %765 = vmatpush3.msra.mxu0 %v415_v47 }
  0x7e   : > { %766 = vmatprep.subr.mxu0 %v414_v48 }
  0x7f   : > { %767 = vmatpush3.msra.mxu0 %v414_v48 }
  0x80   : > { %768 = vmatprep.subr.mxu0 %v413_v49 }
  0x81   : > { %769 = vmatpush3.msra.mxu0 %v413_v49 }
  0x82   : > { %770 = vmatprep.subr.mxu0 %v412_v50 }
  0x83   : > { %771 = vmatpush3.msra.mxu0 %v412_v50 }
  0x84   : > { %772 = vmatprep.subr.mxu0 %v411_v51 }
  0x85   : > { %773 = vmatpush3.msra.mxu0 %v411_v51 }
  0x86   : > { %774 = vmatprep.subr.mxu0 %v410_v52 }
  0x87   : > { %775 = vmatpush3.msra.mxu0 %v410_v52 }
  0x88   : > { %776 = vmatprep.subr.mxu0 %v409_v53 }
  0x89   : > { %777 = vmatpush3.msra.mxu0 %v409_v53 }
  0x8a   : > { %779 = vmatmul.mubr.f32.vlgmr.msra.gmra.mxu0 %v407_v54 }
 0x129   : > { %v710_v56 = vpop.f32.mrf.mxu0 }
 0x12a   : > { %v308_v61 = vadd.f32 %v710_v56, %v235_v57 }
 0x12b   : > { %v302_v59 = vpop.f32.mrf.mxu0 }
 0x12c   : > { %v745_v60 = vpop.f32.mrf.mxu1  ;;  %v303_v62 = vadd.f32 %v302_v59, %v234_v58 }
 0x12d   : > { %v405_v0 = vadd.f32 %v745_v60, %v308_v61 }
 0x12e   : > { %v395_v63 = vpop.f32.mrf.mxu1 }
 0x12f   : > { %v404_v2 = vadd.f32 %v395_v63, %v303_v62 }
 0x14a   : > { %v780_v1 = vpop.f32.mrf.mxu0 }
 0x14b   : > { %v501_v3 = vadd.f32 %v780_v1, %v405_v0 }
 0x14c   : > { %v491_v4 = vpop.f32.mrf.mxu0 }
 0x14d   : > { %v503_v5 = vmax.f32 %v501_v3, 0.0  ;;  %v500_v6 = vadd.f32 %v491_v4, %v404_v2 }
 0x14f   : > { %505 = vst [vmem:[%s203_s28 + $0x8] sm:$0xff] %v503_v5  ;;  %v502_v7 = vmax.f32 %v500_v6, 0.0 }
 0x151   : > { %504 = vst [vmem:[%s203_s28] sm:$0xff] %v502_v7 }
 0x152   : > { %910 = shalt.err (!%p907_p0)
}
 0x153   : > { %s911_s11 = scalar_lea.hbm %s1156_s4, 256  ;;  %s915_s30 = scalar_lea.hbm %s1202_s3, 512 }
 0x154   : > { %p912_p5 = scmp.ne.s32.totalorder %s1156_s4, %s911_s11  ;;  %p916_p4 = scmp.lt.s32.totalorder %s1156_s4, %s1202_s3 }
 0x155   : > { %p917_p6 = scmp.lt.s32.totalorder %s915_s30, %s911_s11 }
 0x156   : > { %p913_p2 = pnand %p912_p5, %p1218_p11 }
 0x157   : > { %p918_p8 = por %p917_p6, %p916_p4 }
 0x158   : > { %p914_p1 = pneg %p913_p2 }
 0x15a   : > { %p919_p3 = pnand %p918_p8, %p914_p1 }
 0x15c   : > { %922 = shalt.err (!%p919_p3)
}
 0x15d   : > { %s973_s20 = smov 128   ;;  %s974_s28 = smov 8  }
 0x15e   : > { %787 = dma.vmem_to_hbm [thread:$0]  (%p1218_p11), %s1151_s29, 256, %s1156_s4, %s507_s8, %s973_s20, %s973_s20, %s974_s28  }
 0x15f PF: > { %s535_s17 = sand.u32 1, %s953_s12   ;;  %p1219_p7 = scmp.ne.s32.totalorder %s1208_s19, 0 }
 0x160   : > { %p1220_p9 = scmp.ge.s32.totalorder %s965_s15, 2  ;;  %s536_s22 = scalar_lea.sflag [#allocation5], %s535_s17 }
 0x162   : > { %p798_p10 = pnand %p1220_p9, %p1219_p7 }
 0x164   : > { %p799_p12 = pneg %p798_p10 }
 0x166   : > { %948 = dma.done.wait (%p799_p12), %s536_s22, 256  }
 0x167   : > { %950 = vsyncadd (%p799_p12), %s536_s22, 4294967040  ;;  %p17_p13 = scmp.ge.s32.totalorder %s1049_s24, 4   ;;  %s1221_s12 = smov %s957_s13 }
 0x168   : > { %s1222_s13 = smov %s961_s14  ;;  %s1223_s14 = smov %s1069_s5 }
 0x169   : > { %s1224_s15 = smov %s1049_s24  ;;  %19 = sbr.rel (!%p17_p13) target bundleno = 6 (0x6), region = 83 }
 0x16e   :  { %541 = vsyncpa [#allocation4], 1 }
 0x16f   :  { %543 = vsyncpa [#allocation4 + $0x1], 1 }
 0x170   :  { %544 = vsyncpa [#allocation7], 1 }
 0x171   :  { %545 = vsyncpa [#allocation5], 1 }
 0x172   :  { %547 = vsyncpa [#allocation5 + $0x1], 1 }

</bundles_post_ra>
